<compile_context>
chip_gen: v7x
topology: tpu7x:2x2x1
jax: 0.10.0
libtpu: 0.0.40
codegen_flags: <defaults>
</compile_context>

<pallas_src>
import jax
import jax.numpy as jnp
from jax.experimental import pallas as pl
from jax.experimental.pallas import tpu as pltpu


# ----------------------------------------------------------------------------
# Pallas kernel: fused 3-layer MLP forward for one batch tile
# ----------------------------------------------------------------------------
def mlp_policy_kernel(x_ref, w1_ref, b1_ref, w2_ref, b2_ref, w3_ref, b3_ref,
                      out_ref):
    x = x_ref[...]                                              # (TB, obs_dim)
    h1 = jnp.tanh(
        jnp.dot(x, w1_ref[...], preferred_element_type=jnp.float32)
        + b1_ref[...])                                          # (TB, hidden) f32
    h2 = jnp.tanh(
        jnp.dot(h1.astype(w2_ref.dtype), w2_ref[...],
                preferred_element_type=jnp.float32)
        + b2_ref[...])                                          # (TB, hidden) f32
    logits = (
        jnp.dot(h2.astype(w3_ref.dtype), w3_ref[...],
                preferred_element_type=jnp.float32)
        + b3_ref[...])                                          # (TB, n_act_pad)
    out_ref[...] = logits.astype(out_ref.dtype)


# ----------------------------------------------------------------------------
# Wrapper: padding, tiling, BlockSpecs
# ----------------------------------------------------------------------------
def _round_up(n, m):
    return ((n + m - 1) // m) * m


def mlp_policy_forward(x, params, *, block_batch=1024, use_bf16=False):
    """x: (batch, obs_dim) float32.
    params: dict of (in, out) weights and (1, out) biases (x @ W + b convention).
    """
    w1, b1, w2, b2, w3, b3 = (params["w1"], params["b1"], params["w2"],
                              params["b2"], params["w3"], params["b3"])
    batch, obs_dim = x.shape
    hidden = w1.shape[1]
    n_act = w3.shape[1]

    # --- lane-dense output: pad the logits dim to a multiple of 128 ----------
    n_act_p = _round_up(n_act, 128)
    if n_act_p != n_act:
        w3 = jnp.pad(w3, ((0, 0), (0, n_act_p - n_act)))
        b3 = jnp.pad(b3, ((0, 0), (0, n_act_p - n_act)))

    # --- bf16 MXU inputs (v6e/v7x); f32 accumulation, biases/output f32 ------
    if use_bf16:
        x = x.astype(jnp.bfloat16)
        w1 = w1.astype(jnp.bfloat16)
        w2 = w2.astype(jnp.bfloat16)
        w3 = w3.astype(jnp.bfloat16)

    # --- batch tiling: TB multiple of 8 sublanes, pad batch to multiple ------
    tb = max(8, min(block_batch, _round_up(batch, 8)))
    tb = _round_up(tb, 8)
    batch_p = _round_up(batch, tb)
    if batch_p != batch:
        x = jnp.pad(x, ((0, batch_p - batch), (0, 0)))
    grid = (batch_p // tb,)

    # --- BlockSpecs: x/out tiled over the grid; weights/biases resident ------
    x_spec = pl.BlockSpec((tb, obs_dim), lambda i: (i, 0))
    out_spec = pl.BlockSpec((tb, n_act_p), lambda i: (i, 0))
    w1_spec = pl.BlockSpec((obs_dim, hidden), lambda i: (0, 0))
    b1_spec = pl.BlockSpec((1, hidden), lambda i: (0, 0))
    w2_spec = pl.BlockSpec((hidden, hidden), lambda i: (0, 0))
    b2_spec = pl.BlockSpec((1, hidden), lambda i: (0, 0))
    w3_spec = pl.BlockSpec((hidden, n_act_p), lambda i: (0, 0))
    b3_spec = pl.BlockSpec((1, n_act_p), lambda i: (0, 0))

    # --- VMEM budget: double-buffered x/out tiles + resident weights + slack -
    w_bytes = sum(int(a.size) * a.dtype.itemsize
                  for a in (w1, b1, w2, b2, w3, b3))
    needed = (2 * tb * obs_dim * x.dtype.itemsize
              + 2 * tb * n_act_p * 4
              + 2 * w_bytes
              + (2 << 20))
    cp_kwargs = dict(dimension_semantics=("parallel",))
    if needed > (16 << 20):
        cp_kwargs["vmem_limit_bytes"] = int(min(needed, 100 << 20))
    compiler_params = pltpu.CompilerParams(**cp_kwargs)

    out = pl.pallas_call(
        mlp_policy_kernel,
        out_shape=jax.ShapeDtypeStruct((batch_p, n_act_p), jnp.float32),
        grid=grid,
        in_specs=[x_spec, w1_spec, b1_spec, w2_spec, b2_spec, w3_spec, b3_spec],
        out_specs=out_spec,
        compiler_params=compiler_params,
    )(x, w1, b1, w2, b2, w3, b3)

    # Slice off batch padding and the lane padding of the logits.
    return out[:batch, :n_act]


# ----------------------------------------------------------------------------
# Deterministic parameter init (mirrors layer_init: orthogonal * std, bias = 0)
# ----------------------------------------------------------------------------
def orthogonal_init(key, in_dim, out_dim, std):
    # TODO(synk): sign/transpose convention for non-square matrices is close to
    # but not byte-identical with torch.nn.init.orthogonal_; parity only, not perf.
    a = jax.random.normal(key, (max(in_dim, out_dim), min(in_dim, out_dim)),
                          dtype=jnp.float32)
    q, r = jnp.linalg.qr(a)
    q = q * jnp.sign(jnp.diagonal(r))
    w_out_in = q.T if out_dim < in_dim else q
    if w_out_in.shape != (out_dim, in_dim):
        w_out_in = w_out_in.T
    return (std * w_out_in).T.astype(jnp.float32)   # -> (in, out)


def init_params(key, obs_dim, hidden, n_actions):
    k1, k2, k3 = jax.random.split(key, 3)
    sqrt2 = jnp.sqrt(2.0)
    return {
        "w1": orthogonal_init(k1, obs_dim, hidden, sqrt2),
        "b1": jnp.zeros((1, hidden), jnp.float32),
        "w2": orthogonal_init(k2, hidden, hidden, sqrt2),
        "b2": jnp.zeros((1, hidden), jnp.float32),
        "w3": orthogonal_init(k3, hidden, n_actions, 0.01),
        "b3": jnp.zeros((1, n_actions), jnp.float32),
    }


# ----------------------------------------------------------------------------
# Pure-JAX reference
# ----------------------------------------------------------------------------
def mlp_policy_ref(x, p):
    h1 = jnp.tanh(x @ p["w1"] + p["b1"])
    h2 = jnp.tanh(h1 @ p["w2"] + p["b2"])
    return h2 @ p["w3"] + p["b3"]


if __name__ == "__main__":
    # Small shapes consistent with the module: flat observation -> 64 -> 64 -> n_actions
    batch, obs_dim, hidden, n_actions = 2, 8, 64, 4

    key = jax.random.PRNGKey(0)
    k_x, k_p, k_x2 = jax.random.split(key, 3)
    x = jax.random.normal(k_x, (batch, obs_dim), dtype=jnp.float32)
    params = init_params(k_p, obs_dim, hidden, n_actions)

    # f32 path, tiny batch (single padded tile)
    out = jax.block_until_ready(mlp_policy_forward(x, params))
    ref = mlp_policy_ref(x, params)
    assert out.shape == (batch, n_actions)
    assert jnp.allclose(out, ref, atol=1e-5, rtol=1e-5)

    # f32 path, multi-tile grid with a partial (padded) last tile
    x2 = jax.random.normal(k_x2, (50, obs_dim), dtype=jnp.float32)
    out2 = jax.block_until_ready(
        mlp_policy_forward(x2, params, block_batch=16))
    ref2 = mlp_policy_ref(x2, params)
    assert out2.shape == (50, n_actions)
    assert jnp.allclose(out2, ref2, atol=1e-5, rtol=1e-5)

    # bf16 MXU path (v6e/v7x optimization), f32 accumulate -> loose tolerance
    out_bf16 = jax.block_until_ready(
        mlp_policy_forward(x2, params, block_batch=16, use_bf16=True))
    assert jnp.allclose(out_bf16, ref2, atol=2e-2, rtol=2e-2)

    print("KERNEL_OK")
</pallas_src>

<mosaic_0001>
module attributes {stable_mosaic.version = 11 : i64} {
  func.func @mlp_policy_kernel(%arg0: i32, %arg1: memref<8x8xf32, #tpu.memory_space<vmem>>, %arg2: memref<8x64xf32, #tpu.memory_space<vmem>>, %arg3: memref<1x64xf32, #tpu.memory_space<vmem>>, %arg4: memref<64x64xf32, #tpu.memory_space<vmem>>, %arg5: memref<1x64xf32, #tpu.memory_space<vmem>>, %arg6: memref<64x128xf32, #tpu.memory_space<vmem>>, %arg7: memref<1x128xf32, #tpu.memory_space<vmem>>, %arg8: memref<8x128xf32, #tpu.memory_space<vmem>>) attributes {dimension_semantics = [#tpu.dimension_semantics<parallel>], iteration_bounds = array<i64: 1>, scalar_prefetch = 0 : i64, scratch_operands = 0 : i64, tpu.core_type = #tpu.core_type<tc>, window_params = [{transform_indices = @transform_0, window_bounds = array<i64: 8, 8>}, {pipeline_mode = #tpu.pipeline_mode<synchronous>, transform_indices = @transform_1, window_bounds = array<i64: 8, 64>}, {pipeline_mode = #tpu.pipeline_mode<synchronous>, transform_indices = @transform_2, window_bounds = array<i64: 1, 64>}, {pipeline_mode = #tpu.pipeline_mode<synchronous>, transform_indices = @transform_3, window_bounds = array<i64: 64, 64>}, {pipeline_mode = #tpu.pipeline_mode<synchronous>, transform_indices = @transform_4, window_bounds = array<i64: 1, 64>}, {pipeline_mode = #tpu.pipeline_mode<synchronous>, transform_indices = @transform_5, window_bounds = array<i64: 64, 128>}, {pipeline_mode = #tpu.pipeline_mode<synchronous>, transform_indices = @transform_6, window_bounds = array<i64: 1, 128>}, {transform_indices = @transform_7, window_bounds = array<i64: 8, 128>}]} {
    %c0 = arith.constant 0 : index
    %c0_0 = arith.constant 0 : index
    %0 = vector.load %arg1[%c0, %c0_0] : memref<8x8xf32, #tpu.memory_space<vmem>>, vector<8x8xf32>
    %c0_1 = arith.constant 0 : index
    %c0_2 = arith.constant 0 : index
    %1 = vector.load %arg2[%c0_1, %c0_2] : memref<8x64xf32, #tpu.memory_space<vmem>>, vector<8x64xf32>
    %cst = arith.constant dense<0.000000e+00> : vector<8x64xf32>
    %2 = tpu.matmul %0, %1, %cst {dimension_numbers = #tpu.dot_dimension_numbers<[1], [0], [0], [1], [0, 0, 1, 1], [], []>} : vector<8x8xf32>, vector<8x64xf32>, vector<8x64xf32> -> vector<8x64xf32>
    %c0_3 = arith.constant 0 : index
    %c0_4 = arith.constant 0 : index
    %3 = vector.load %arg3[%c0_3, %c0_4] : memref<1x64xf32, #tpu.memory_space<vmem>>, vector<1x64xf32>
    %4 = vector.broadcast %3 : vector<1x64xf32> to vector<8x64xf32>
    %5 = arith.addf %2, %4 : vector<8x64xf32>
    %6 = math.tanh %5 : vector<8x64xf32>
    %c0_5 = arith.constant 0 : index
    %c0_6 = arith.constant 0 : index
    %7 = vector.load %arg4[%c0_5, %c0_6] : memref<64x64xf32, #tpu.memory_space<vmem>>, vector<64x64xf32>
    %cst_7 = arith.constant dense<0.000000e+00> : vector<8x64xf32>
    %8 = tpu.matmul %6, %7, %cst_7 {dimension_numbers = #tpu.dot_dimension_numbers<[1], [0], [0], [1], [0, 0, 1, 1], [], []>} : vector<8x64xf32>, vector<64x64xf32>, vector<8x64xf32> -> vector<8x64xf32>
    %c0_8 = arith.constant 0 : index
    %c0_9 = arith.constant 0 : index
    %9 = vector.load %arg5[%c0_8, %c0_9] : memref<1x64xf32, #tpu.memory_space<vmem>>, vector<1x64xf32>
    %10 = vector.broadcast %9 : vector<1x64xf32> to vector<8x64xf32>
    %11 = arith.addf %8, %10 : vector<8x64xf32>
    %12 = math.tanh %11 : vector<8x64xf32>
    %c0_10 = arith.constant 0 : index
    %c0_11 = arith.constant 0 : index
    %13 = vector.load %arg6[%c0_10, %c0_11] : memref<64x128xf32, #tpu.memory_space<vmem>>, vector<64x128xf32>
    %cst_12 = arith.constant dense<0.000000e+00> : vector<8x128xf32>
    %14 = tpu.matmul %12, %13, %cst_12 {dimension_numbers = #tpu.dot_dimension_numbers<[1], [0], [0], [1], [0, 0, 1, 1], [], []>} : vector<8x64xf32>, vector<64x128xf32>, vector<8x128xf32> -> vector<8x128xf32>
    %c0_13 = arith.constant 0 : index
    %c0_14 = arith.constant 0 : index
    %15 = vector.load %arg7[%c0_13, %c0_14] : memref<1x128xf32, #tpu.memory_space<vmem>>, vector<1x128xf32>
    %16 = vector.broadcast %15 : vector<1x128xf32> to vector<8x128xf32>
    %17 = arith.addf %14, %16 : vector<8x128xf32>
    %c0_15 = arith.constant 0 : index
    %c0_16 = arith.constant 0 : index
    %18 = vector.load %arg8[%c0_15, %c0_16] : memref<8x128xf32, #tpu.memory_space<vmem>>, vector<8x128xf32>
    tpu.vector_store %arg8[%c0_15, %c0_16], %17 {strides = array<i32>} : memref<8x128xf32, #tpu.memory_space<vmem>>, vector<8x128xf32>,
    return
  }
  func.func @transform_0(%arg0: i32) -> (i32, i32) {
    %c0_i32 = arith.constant 0 : i32
    %c0_i32_0 = arith.constant 0 : i32
    return %arg0, %c0_i32 : i32, i32
  }
  func.func @transform_1(%arg0: i32) -> (i32, i32) {
    %c0_i32 = arith.constant 0 : i32
    %c0_i32_0 = arith.constant 0 : i32
    %c0_i32_1 = arith.constant 0 : i32
    return %c0_i32, %c0_i32_0 : i32, i32
  }
  func.func @transform_2(%arg0: i32) -> (i32, i32) {
    %c0_i32 = arith.constant 0 : i32
    %c0_i32_0 = arith.constant 0 : i32
    %c0_i32_1 = arith.constant 0 : i32
    return %c0_i32, %c0_i32_0 : i32, i32
  }
  func.func @transform_3(%arg0: i32) -> (i32, i32) {
    %c0_i32 = arith.constant 0 : i32
    %c0_i32_0 = arith.constant 0 : i32
    %c0_i32_1 = arith.constant 0 : i32
    return %c0_i32, %c0_i32_0 : i32, i32
  }
  func.func @transform_4(%arg0: i32) -> (i32, i32) {
    %c0_i32 = arith.constant 0 : i32
    %c0_i32_0 = arith.constant 0 : i32
    %c0_i32_1 = arith.constant 0 : i32
    return %c0_i32, %c0_i32_0 : i32, i32
  }
  func.func @transform_5(%arg0: i32) -> (i32, i32) {
    %c0_i32 = arith.constant 0 : i32
    %c0_i32_0 = arith.constant 0 : i32
    %c0_i32_1 = arith.constant 0 : i32
    return %c0_i32, %c0_i32_0 : i32, i32
  }
  func.func @transform_6(%arg0: i32) -> (i32, i32) {
    %c0_i32 = arith.constant 0 : i32
    %c0_i32_0 = arith.constant 0 : i32
    %c0_i32_1 = arith.constant 0 : i32
    return %c0_i32, %c0_i32_0 : i32, i32
  }
  func.func @transform_7(%arg0: i32) -> (i32, i32) {
    %c0_i32 = arith.constant 0 : i32
    %c0_i32_0 = arith.constant 0 : i32
    return %arg0, %c0_i32 : i32, i32
  }
}

</mosaic_0001>

<bundles_post_ra>
// kernel: tpu_custom_call.1
= control target key start
LH: loop header
LB: loop body
LE: loop exit
PB: predicated region body
PF: predicated region fallthrough
CT: control target
= control target key end

     0   :  { %12 = vsyncpa [#allocation3], 0  ;;  %s704_s0 = inlined_call_operand.hbm [shape: f32[8,8], index: 0, kind: input, shape index: {}]   ;;  %s705_s1 = inlined_call_operand.hbm [shape: f32[8,64], index: 1, kind: input, shape index: {}]   ;;  %s706_s2 = inlined_call_operand.vmem [shape: f32[1,64], index: 2, kind: input, shape index: {}]   ;;  %s707_s3 = inlined_call_operand.hbm [shape: f32[64,64], index: 3, kind: input, shape index: {}]   ;;  %s708_s4 = inlined_call_operand.vmem [shape: f32[1,64], index: 4, kind: input, shape index: {}]   ;;  %s709_s5 = inlined_call_operand.hbm [shape: f32[64,128], index: 5, kind: input, shape index: {}]   ;;  %s710_s6 = inlined_call_operand.vmem [shape: f32[1,128], index: 6, kind: input, shape index: {}]   ;;  %s711_s7 = inlined_call_operand.hbm [shape: f32[8,128], index: 7, kind: output, shape index: {}]  }
   0x1   :  { %13 = vsyncpa [#allocation6], 0 }
   0x2   :  { %14 = vsyncpa [#allocation9], 0 }
   0x3   :  { %15 = vsyncpa [#allocation4], 0  ;;  %s583_s24 = smov [#allocation5]   ;;  %s584_s26 = smov [#allocation2]  }
   0x4   :  { %s32_s25 = sshll.u32 %s583_s24, 4  ;;  %s22_s27 = sshll.u32 %s584_s26, 4  ;;  %s33_s25 = int_to_ptr.vmem [resolvable:$true] %s32_s25  ;;  %s23_s27 = int_to_ptr.vmem [resolvable:$true] %s22_s27 }
   0x5   :  { %s465_s30 = scalar_lea.hbm %s705_s1, 128 }
   0x6   :  { %p466_p0 = scmp.ne.s32.totalorder %s705_s1, %s465_s30  ;;  %p469_p1 = scmp.lt.u32.totalorder %s465_s30, %s705_s1 }
   0x8   :  { %p471_p2 = pnand %p469_p1, %p466_p0 }
   0xa   :  { %474 = shalt.err (!%p471_p2)
}
   0xb   :  { %s475_s12 = scalar_lea.vmem %s33_s25, 128  ;;  %p480_p4 = scmp.lt.s32.totalorder %s33_s25, %s33_s25 }
   0xc   :  { %p476_p3 = scmp.ne.s32.totalorder %s33_s25, %s475_s12  ;;  %p481_p5 = scmp.lt.s32.totalorder %s475_s12, %s475_s12 }
   0xe   :  { %p482_p6 = por %p481_p5, %p480_p4 }
  0x10   :  { %p483_p7 = pnand %p482_p6, %p476_p3 }
  0x12   :  { %486 = shalt.err (!%p483_p7)
}
  0x13   :  { %35 = dma.hbm_to_vmem [thread:$0]  %s705_s1, 128, %s33_s25, [#allocation6]  }
  0x14   :  { %s487_s17 = scalar_lea.hbm %s704_s0, 128 }
  0x15   :  { %p488_p8 = scmp.ne.s32.totalorder %s704_s0, %s487_s17  ;;  %p491_p9 = scmp.lt.u32.totalorder %s487_s17, %s704_s0 }
  0x17   :  { %p493_p10 = pnand %p491_p9, %p488_p8 }
  0x19   :  { %496 = shalt.err (!%p493_p10)
}
  0x1a   :  { %s497_s22 = scalar_lea.vmem %s23_s27, 128  ;;  %p502_p12 = scmp.lt.s32.totalorder %s23_s27, %s23_s27 }
  0x1b   :  { %p498_p11 = scmp.ne.s32.totalorder %s23_s27, %s497_s22  ;;  %p503_p13 = scmp.lt.s32.totalorder %s497_s22, %s497_s22 }
  0x1d   :  { %p504_p0 = por %p503_p13, %p502_p12 }
  0x1f   :  { %p505_p1 = pnand %p504_p0, %p498_p11 }
  0x21   :  { %508 = shalt.err (!%p505_p1)
}
  0x22   :  { %25 = dma.hbm_to_vmem [thread:$0]  %s704_s0, 128, %s23_s27, [#allocation3]  }
  0x23   :  { %s585_s24 = smov [#allocation7]   ;;  %s509_s29 = scalar_lea.hbm %s707_s3, 1024 }
  0x24   :  { %s43_s25 = sshll.u32 %s585_s24, 4  ;;  %p510_p2 = scmp.ne.s32.totalorder %s707_s3, %s509_s29  ;;  %s44_s25 = int_to_ptr.vmem [resolvable:$true] %s43_s25 }
  0x25   :  { %p513_p3 = scmp.lt.u32.totalorder %s509_s29, %s707_s3 }
  0x27   :  { %p515_p4 = pnand %p513_p3, %p510_p2 }
  0x29   :  { %518 = shalt.err (!%p515_p4)
}
  0x2a   :  { %s519_s11 = scalar_lea.vmem %s44_s25, 1024  ;;  %p524_p6 = scmp.lt.s32.totalorder %s44_s25, %s44_s25 }
  0x2b   :  { %p520_p5 = scmp.ne.s32.totalorder %s44_s25, %s519_s11  ;;  %p525_p7 = scmp.lt.s32.totalorder %s519_s11, %s519_s11 }
  0x2d   :  { %p526_p8 = por %p525_p7, %p524_p6 }
  0x2f   :  { %p527_p9 = pnand %p526_p8, %p520_p5 }
  0x31   :  { %530 = shalt.err (!%p527_p9)
}
  0x32   :  { %s586_s0 = smov 128   ;;  %s587_s27 = smov 8  }
  0x33   :  { %49 = dma.hbm_to_vmem [thread:$0]  %s707_s3, 1024, %s44_s25, [#allocation6], %s586_s0, %s586_s0, %s587_s27  }
  0x34   :  { %s588_s14 = smov [#allocation8]   ;;  %s531_s18 = scalar_lea.hbm %s709_s5, 1024 }
  0x35   :  { %s57_s15 = sshll.u32 %s588_s14, 4  ;;  %p532_p10 = scmp.ne.s32.totalorder %s709_s5, %s531_s18  ;;  %s58_s15 = int_to_ptr.vmem [resolvable:$true] %s57_s15 }
  0x36   :  { %p535_p11 = scmp.lt.u32.totalorder %s531_s18, %s709_s5 }
  0x38   :  { %p537_p12 = pnand %p535_p11, %p532_p10 }
  0x3a   :  { %540 = shalt.err (!%p537_p12)
}
  0x3b   :  { %s541_s1 = scalar_lea.vmem %s58_s15, 1024  ;;  %p546_p0 = scmp.lt.s32.totalorder %s58_s15, %s58_s15 }
  0x3c   :  { %p542_p13 = scmp.ne.s32.totalorder %s58_s15, %s541_s1  ;;  %p547_p1 = scmp.lt.s32.totalorder %s541_s1, %s541_s1 }
  0x3e   :  { %p548_p2 = por %p547_p1, %p546_p0 }
  0x40   :  { %p549_p3 = pnand %p548_p2, %p542_p13 }
  0x42   :  { %552 = shalt.err (!%p549_p3)
}
  0x43   :  { %63 = dma.hbm_to_vmem [thread:$0]  %s709_s5, 1024, %s58_s15, [#allocation9], %s586_s0, %s586_s0, %s587_s27  }
  0x44   :  { %575 = dma.done.wait [#allocation3], 128  }
  0x45   :  { %576 = vsyncadd [#allocation3], 4294967168 }
  0x46   :  { %577 = dma.done.wait [#allocation6], 1152  }
  0x47   :  { %578 = vsyncadd [#allocation6], 4294966144 }
  0x48   :  { %579 = dma.done.wait [#allocation9], 1024  }
  0x49   :  { %580 = vsyncadd [#allocation9], 4294966272  ;;  %v589_v0 = vmov 0.0   ;;  %vm590_vm0 = vmmov 0   ;;  %v591_v1 = vmov 0.0|0.0   ;;  %vm87_vm1 = vcmask 64512  }
  0x4a   :  { %384 = vmatprep.subr.mxu0 %v589_v0  ;;  %386 = vmatprep.mubr.msk.f32.mxu0 %vm590_vm0, %v589_v0  ;;  %v79_v2 = vld [vmem:[#allocation5] sm:$0xff]  ;;  %v78_v3 = vld [vmem:[#allocation2] sm:$0xff]  ;;  %v162_v4 = vld [vmem:[#allocation7] sm:$0xff]  ;;  %vm177_vm2 = vcmask 523264   ;;  %s592_s29 = smov [#allocation10]  }
  0x4b   :  { %427 = vmatprep.subr.bf16.mxu1 %v591_v1  ;;  %405 = vmatprep.mubr.msk.f32.mxu1 %vm590_vm0, %v589_v0  ;;  %v163_v5 = vld [vmem:[#allocation7 + $0x8] sm:$0xff]  ;;  %v164_v7 = vld [vmem:[#allocation7 + $0x10] sm:$0xff]  ;;  %v165_v8 = vld [vmem:[#allocation7 + $0x18] sm:$0xff]  ;;  %s347_s30 = sshll.u32 %s592_s29, 4  ;;  %s348_s30 = int_to_ptr.vmem [resolvable:$true] %s347_s30 }
  0x4c   :  { %385 = vmatpush3.msra.mxu0 %v79_v2  ;;  %v428_v6 = vpack.c.bf16 %v163_v5, %v162_v4  ;;  %v431_v9 = vpack.c.bf16 %v165_v8, %v164_v7  ;;  %v166_v10 = vld [vmem:[#allocation7 + $0x20] sm:$0xff]  ;;  %v167_v11 = vld [vmem:[#allocation7 + $0x28] sm:$0xff]  ;;  %v168_v13 = vld [vmem:[#allocation7 + $0x30] sm:$0xff]  ;;  %s553_s8 = scalar_lea.vmem %s348_s30, 128  ;;  %p558_p5 = scmp.lt.s32.totalorder %s348_s30, %s348_s30 }
  0x4d   :  { %387 = vmatmul.mubr.msk.f32.vlgmr.msra.gmra.mrb[0].mxu0 %vm87_vm1, %v78_v3  ;;  %439 = vmatprep.subr.bf16.mxu0 %v591_v1  ;;  %v434_v12 = vpack.c.bf16 %v167_v11, %v166_v10  ;;  %v169_v14 = vld [vmem:[#allocation7 + $0x38] sm:$0xff]  ;;  %v252_v16 = vld [vmem:[#allocation8] sm:$0xff]  ;;  %v253_v17 = vld [vmem:[#allocation8 + $0x8] sm:$0xff]  ;;  %p554_p4 = scmp.ne.s32.totalorder %s348_s30, %s553_s8  ;;  %p559_p6 = scmp.lt.s32.totalorder %s553_s8, %s553_s8 }
  0x4e   :  { %424 = vmatprep.mubr.msk.f32.mxu0 %vm590_vm0, %v589_v0  ;;  %429 = vmatpush3.bf16.msra.mxu1 %v428_v6  ;;  %v437_v15 = vpack.c.bf16 %v169_v14, %v168_v13  ;;  %v440_v18 = vpack.c.bf16 %v253_v17, %v252_v16  ;;  %v358_v19 = vld [vmem:[%s706_s2] ss:$0 sm:$0xff]  ;;  %v255_v25 = vld [vmem:[#allocation8 + $0x18] sm:$0xff]  ;;  %v256_v27 = vld [vmem:[#allocation8 + $0x20] sm:$0xff] }
  0x4f   :  { %430 = vmatprep.subr.bf16.mxu1 %v591_v1  ;;  %v254_v24 = vld [vmem:[#allocation8 + $0x10] sm:$0xff]  ;;  %v257_v28 = vld [vmem:[#allocation8 + $0x28] sm:$0xff]  ;;  %v259_v31 = vld [vmem:[#allocation8 + $0x38] sm:$0xff]  ;;  %p560_p7 = por %p559_p6, %p558_p5 }
  0x50   :  { %441 = vmatpush3.bf16.msra.mxu0 %v440_v18  ;;  %v443_v26 = vpack.c.bf16 %v255_v25, %v254_v24  ;;  %v446_v29 = vpack.c.bf16 %v257_v28, %v256_v27  ;;  %v258_v30 = vld [vmem:[#allocation8 + $0x30] sm:$0xff] }
  0x51   :  { %442 = vmatprep.subr.bf16.mxu0 %v591_v1  ;;  %v449_v32 = vpack.c.bf16 %v259_v31, %v258_v30  ;;  %v360_v33 = vld [vmem:[%s708_s4] ss:$0 sm:$0xff]  ;;  %p561_p8 = pnand %p560_p7, %p554_p4 }
  0x52   :  { %432 = vmatpush3.bf16.msra.mxu1 %v431_v9  ;;  %v362_v38 = vld [vmem:[%s710_s6] ss:$0 sm:$0xff] }
  0x53   :  { %433 = vmatprep.subr.bf16.mxu1 %v591_v1 }
  0x54   :  { %444 = vmatpush3.bf16.msra.mxu0 %v443_v26 }
  0x55   :  { %445 = vmatprep.subr.bf16.mxu0 %v591_v1 }
  0x56   :  { %435 = vmatpush3.bf16.msra.mxu1 %v434_v12 }
  0x57   :  { %436 = vmatprep.subr.bf16.mxu1 %v591_v1 }
  0x58   :  { %447 = vmatpush3.bf16.msra.mxu0 %v446_v29 }
  0x59   :  { %448 = vmatprep.subr.bf16.mxu0 %v591_v1 }
  0x5a   :  { %438 = vmatpush3.bf16.msra.mxu1 %v437_v15 }
  0x5c   :  { %450 = vmatpush3.bf16.msra.mxu0 %v449_v32 }
 0x120   :  { %v157_v20 = vpop.f32.mrb[0].mxu0 }
 0x121   :  { %v158_v21 = vadd.f32 %v358_v19, %v157_v20  ;;  %v388_v22 = vpop.f32.mrb[1].mxu0 }
 0x123   :  { %461 = vtanh.f32 %v158_v21 }
 0x12d   :  { %v462_v23 = vpop.eup %461 }
 0x12e   :  { %406 = vmatmul.mubr.msk.f32.vlgmr.msra.gmra.mrb[0].mxu1 %vm177_vm2, %v462_v23 }
 0x201   :  { %v247_v34 = vpop.f32.mrb[0].mxu1 }
 0x202   :  { %v248_v35 = vadd.f32 %v360_v33, %v247_v34  ;;  %v407_v36 = vpop.f32.mrb[1].mxu1 }
 0x204   :  { %463 = vtanh.f32 %v248_v35 }
 0x20e   :  { %v464_v37 = vpop.eup %463 }
 0x20f   :  { %425 = vmatmul.mubr.msk.f32.vlgmr.msra.gmra.mrb[2].mxu0 %vm177_vm2, %v464_v37 }
 0x2e2   :  { %v336_v39 = vpop.f32.mrb[2].mxu0 }
 0x2e3   :  { %v337_v40 = vadd.f32 %v362_v38, %v336_v39  ;;  %v426_v41 = vpop.f32.mrb[3].mxu0 }
 0x2e5   :  { %340 = vst [vmem:[#allocation10] sm:$0xff] %v337_v40 }
 0x2e6   :  { %564 = shalt.err (!%p561_p8)
}
 0x2e7   :  { %s565_s10 = scalar_lea.hbm %s711_s7, 128 }
 0x2e8   :  { %p566_p9 = scmp.ne.s32.totalorder %s711_s7, %s565_s10  ;;  %p569_p10 = scmp.lt.u32.totalorder %s565_s10, %s711_s7 }
 0x2ea   :  { %p571_p11 = pnand %p569_p10, %p566_p9 }
 0x2ec   :  { %574 = shalt.err (!%p571_p11)
}
 0x2ed   :  { %350 = dma.vmem_to_hbm [thread:$0]  %s348_s30, 128, %s711_s7, [#allocation4]  }
 0x2ee   :  { %581 = dma.done.wait [#allocation4], 128  }
 0x2ef   :  { %582 = vsyncadd [#allocation4], 4294967168 }
 0x2f0   :  { %354 = vsyncpa [#allocation3], 1 }
 0x2f1   :  { %355 = vsyncpa [#allocation6], 1 }
 0x2f2   :  { %356 = vsyncpa [#allocation9], 1 }
 0x2f3   :  { %357 = vsyncpa [#allocation4], 1 }

</bundles_post_ra>
